<compile_context>
chip_gen: v7x
topology: tpu7x:2x2x1
jax: 0.10.0
libtpu: 0.0.40
codegen_flags: <defaults>
</compile_context>

<pallas_src>
import functools
import math

import jax
import jax.numpy as jnp
from jax.experimental import pallas as pl
from jax.experimental.pallas import tpu as pltpu


# ---------------------------------------------------------------------------
# Kernels
# ---------------------------------------------------------------------------
def _attn_body(q_ref, k_ref, v_ref, ctx_ref, attn_ref, *, scale, mask_ref=None):
    # Fold scale into q (smaller than s when Lk > D). Python-float scale is
    # weakly typed, so bf16 q stays bf16 for the MXU (no cast dance).
    q = q_ref[...] * scale                                   # (Bb, TQ, D)
    k = k_ref[...]                                           # (Bb, Lk, D)
    v = v_ref[...]                                           # (Bb, Lk, Dv)

    # scores: batched matmul contracting the feature dim of both (no .T relayout).
    s = jnp.einsum("bqd,bkd->bqk", q, k, preferred_element_type=jnp.float32)

    if mask_ref is not None:
        # masked_fill_(attn_mask, 1e-9) -- value replace pre-softmax, exactly
        # as in the PyTorch source (note: NOT -inf masking).
        s = jnp.where(mask_ref[...] != 0, jnp.float32(1e-9), s)

    # Numerically stable softmax over the last dim; reciprocal on the EUP slot.
    m = jnp.max(s, axis=-1, keepdims=True)
    p = jnp.exp(s - m)
    denom = jnp.sum(p, axis=-1, keepdims=True)
    attn = p * pl.reciprocal(denom, approx=True)             # (Bb, TQ, Lk) f32

    # dropout(p=0.1): identity (eval mode).

    ctx = jnp.einsum("bqk,bkd->bqd", attn.astype(v.dtype), v,
                     preferred_element_type=jnp.float32)     # (Bb, TQ, Dv)

    attn_ref[...] = attn.astype(attn_ref.dtype)
    ctx_ref[...] = ctx.astype(ctx_ref.dtype)


def _attn_kernel_masked(q_ref, k_ref, v_ref, mask_ref, ctx_ref, attn_ref, *, scale):
    _attn_body(q_ref, k_ref, v_ref, ctx_ref, attn_ref, scale=scale, mask_ref=mask_ref)


def _attn_kernel_nomask(q_ref, k_ref, v_ref, ctx_ref, attn_ref, *, scale):
    _attn_body(q_ref, k_ref, v_ref, ctx_ref, attn_ref, scale=scale, mask_ref=None)


# ---------------------------------------------------------------------------
# Tiling / VMEM planning helpers
# ---------------------------------------------------------------------------
def _vmem_capacity_bytes():
    """Physical VMEM per TensorCore; conservative 64 MiB if query fails."""
    try:
        info = pltpu.get_tpu_info()
        cap = getattr(info, "vmem_capacity_bytes", None)
        if cap:
            return int(cap)
    except Exception:
        pass
    return 64 << 20


def _pick_q_block(lq, target, align):
    """Largest multiple of `align` that divides lq and is <= target, else lq."""
    if lq <= target:
        return lq
    b = (target // align) * align
    while b >= align:
        if lq % b == 0:
            return b
        b -= align
    return lq


def _estimate_vmem(bb, tq, lk, d, dv, itemsize, attn_itemsize, has_mask, kv_bufs):
    """Per-step VMEM working-set estimate (buffers + f32 intermediates)."""
    q_ctx = 2 * bb * tq * (d + dv) * itemsize            # q + ctx, double-buffered
    kv = kv_bufs * bb * lk * (d + dv) * itemsize          # k + v
    attn_out = 2 * bb * tq * lk * attn_itemsize           # attn output, double-buffered
    mask = (2 * bb * tq * lk) if has_mask else 0          # int8 mask, double-buffered
    interm = 4 * bb * tq * lk * 4                         # s, p, attn f32 (+ margin)
    return q_ctx + kv + attn_out + mask + interm


def _pick_batch_block(b_total, budget, est_fn):
    """Largest divisor of B whose estimated working set fits the budget."""
    for bb in range(b_total, 0, -1):
        if b_total % bb:
            continue
        e = est_fn(bb)
        if e <= budget:
            return bb, e
    return 1, est_fn(1)


# ---------------------------------------------------------------------------
# Wrapper
# ---------------------------------------------------------------------------
def attention(q, k, v, scale, attn_mask=None, attn_dtype=None):
    """Pallas scaled-dot-product attention.

    q: (B, Lq, D), k: (B, Lk, D), v: (B, Lk, Dv)
    scale: python float (or 0-d value convertible to float)
    attn_mask: optional (B, Lq, Lk) bool/num array, True/nonzero = masked.
    attn_dtype: optional dtype for the returned attention matrix (e.g.
      jnp.bfloat16 to halve its HBM writeback); defaults to q.dtype.
    Returns (context (B, Lq, Dv), attention (B, Lq, Lk)).
    """
    B, Lq, D = q.shape
    Bk, Lk, Dk = k.shape
    Bv, Lkv, Dv = v.shape
    assert Dk == D and Bk == B and Bv == B and Lkv == Lk

    scale = float(scale)
    has_mask = attn_mask is not None
    itemsize = jnp.dtype(q.dtype).itemsize
    align = max(8, 32 // itemsize)                     # 8 f32, 16 bf16, 32 int8
    attn_dtype = jnp.dtype(attn_dtype) if attn_dtype is not None else jnp.dtype(q.dtype)
    attn_itemsize = attn_dtype.itemsize

    # Generation-aware VMEM budget & limit cap.
    capacity = _vmem_capacity_bytes()
    budget = int(0.40 * capacity)                      # ~26 MiB v7x, ~51 MiB v5e/v6e
    limit_cap = max(32 << 20, capacity - (16 << 20))   # keep compiler-scratch headroom

    def plan(tq_):
        single_kv = (Lq // tq_) > 1                    # k/v invariant across Lq axis
        kv_bufs = 1 if single_kv else 2
        est_planned = functools.partial(_estimate_vmem, tq=tq_, lk=Lk, d=D, dv=Dv,
                                        itemsize=itemsize, attn_itemsize=attn_itemsize,
                                        has_mask=has_mask, kv_bufs=kv_bufs)
        bb_, est_p = _pick_batch_block(B, budget, lambda bb: est_planned(bb))
        est_c = _estimate_vmem(bb_, tq_, Lk, D, Dv, itemsize, attn_itemsize,
                               has_mask, 2)            # conservative (2 kv buffers)
        return bb_, single_kv, est_p, est_c

    tq = _pick_q_block(Lq, target=512, align=align)
    bb, single_kv, est_p, est_c = plan(tq)
    # Prefer shrinking tq over blowing past the budget / raising the limit.
    while bb == 1 and est_p > budget and tq > align:
        new_tq = _pick_q_block(Lq, target=max(align, tq // 2), align=align)
        if new_tq == tq:
            break
        tq = new_tq
        bb, single_kv, est_p, est_c = plan(tq)

    grid = (B // bb, Lq // tq)

    # Batch axis parallel; when there are >=2 batch blocks, keep the Lq axis
    # sequential so megacore (v7x) shards batch and per-core k/v reuse is kept.
    dim_sem = ("parallel", "arbitrary" if grid[0] >= 2 else "parallel")
    compiler_kwargs = dict(dimension_semantics=dim_sem)
    if est_c > (16 << 20):
        compiler_kwargs["vmem_limit_bytes"] = int(
            min(limit_cap, max(32 << 20, est_c + (8 << 20))))
    compiler_params = pltpu.CompilerParams(**compiler_kwargs)

    out_shape = (
        jax.ShapeDtypeStruct((B, Lq, Dv), q.dtype),               # context
        jax.ShapeDtypeStruct((B, Lq, Lk), attn_dtype),            # attention
    )
    out_specs = [
        pl.BlockSpec((bb, tq, Dv), lambda b, i: (b, i, 0)),       # context
        pl.BlockSpec((bb, tq, Lk), lambda b, i: (b, i, 0)),       # attention
    ]

    if has_mask:
        mask_i8 = (jnp.asarray(attn_mask) != 0).astype(jnp.int8)  # 1 byte/elem
        body = functools.partial(_attn_kernel_masked, scale=scale)
        args = (q, k, v, mask_i8)
    else:
        body = functools.partial(_attn_kernel_nomask, scale=scale)
        args = (q, k, v)

    def build(use_single_kv_buffer):
        kv_kwargs = (
            {"pipeline_mode": pl.Buffered(buffer_count=1)}
            if use_single_kv_buffer else {}
        )
        in_specs = [
            pl.BlockSpec((bb, tq, D), lambda b, i: (b, i, 0)),            # q
            pl.BlockSpec((bb, Lk, D), lambda b, i: (b, 0, 0), **kv_kwargs),   # k
            pl.BlockSpec((bb, Lk, Dv), lambda b, i: (b, 0, 0), **kv_kwargs),  # v
        ]
        if has_mask:
            in_specs.append(pl.BlockSpec((bb, tq, Lk), lambda b, i: (b, i, 0)))
        return pl.pallas_call(
            body,
            out_shape=out_shape,
            grid=grid,
            in_specs=in_specs,
            out_specs=out_specs,
            compiler_params=compiler_params,
        )

    try:
        ctx, attn = build(single_kv)(*args)
    except Exception:
        if not single_kv:
            raise
        # pipeline_mode=Buffered(1) rejected -> fall back to default buffering.
        ctx, attn = build(False)(*args)

    return ctx, attn


# ---------------------------------------------------------------------------
# Pure-JAX reference & test
# ---------------------------------------------------------------------------
def _reference(q, k, v, scale, attn_mask=None):
    s = jnp.einsum("bqd,bkd->bqk", q, k) * scale
    if attn_mask is not None:
        s = jnp.where(attn_mask != 0, 1e-9, s)
    attn = jax.nn.softmax(s, axis=-1)
    ctx = jnp.einsum("bqk,bkd->bqd", attn, v)
    return ctx, attn


if __name__ == "__main__":
    key = jax.random.PRNGKey(0)

    # --- small shapes consistent with the LSTM-attention module -------------
    B, Lq, Lk, D, Dv = 2, 8, 8, 32, 32
    kq, kk, kv, km = jax.random.split(key, 4)
    q = jax.random.normal(kq, (B, Lq, D), dtype=jnp.float32)
    k = jax.random.normal(kk, (B, Lk, D), dtype=jnp.float32)
    v = jax.random.normal(kv, (B, Lk, Dv), dtype=jnp.float32)
    scale = 1.0 / math.sqrt(D)
    attn_mask = jax.random.bernoulli(km, p=0.25, shape=(B, Lq, Lk))

    # masked path
    ctx, attn = attention(q, k, v, scale, attn_mask)
    ctx = jax.block_until_ready(ctx)
    attn = jax.block_until_ready(attn)
    ctx_ref, attn_ref = _reference(q, k, v, scale, attn_mask)
    assert ctx.shape == (B, Lq, Dv) and attn.shape == (B, Lq, Lk)
    assert jnp.allclose(ctx, ctx_ref, atol=2e-3, rtol=2e-3)
    assert jnp.allclose(attn, attn_ref, atol=2e-3, rtol=2e-3)

    # mask-free path (separate kernel variant, no mask stream)
    ctx2, attn2 = attention(q, k, v, scale, None)
    ctx2 = jax.block_until_ready(ctx2)
    attn2 = jax.block_until_ready(attn2)
    ctx2_ref, attn2_ref = _reference(q, k, v, scale, None)
    assert jnp.allclose(ctx2, ctx2_ref, atol=2e-3, rtol=2e-3)
    assert jnp.allclose(attn2, attn2_ref, atol=2e-3, rtol=2e-3)

    # --- larger run: exercises Lq tiling (grid[1] > 1) + Buffered(1) k/v ----
    B3, Lq3, Lk3, D3, Dv3 = 4, 1024, 64, 32, 32
    kq3, kk3, kv3 = jax.random.split(jax.random.PRNGKey(1), 3)
    q3 = jax.random.normal(kq3, (B3, Lq3, D3), dtype=jnp.float32)
    k3 = jax.random.normal(kk3, (B3, Lk3, D3), dtype=jnp.float32)
    v3 = jax.random.normal(kv3, (B3, Lk3, Dv3), dtype=jnp.float32)
    scale3 = 1.0 / math.sqrt(D3)
    ctx3, attn3 = attention(q3, k3, v3, scale3, None)
    ctx3 = jax.block_until_ready(ctx3)
    attn3 = jax.block_until_ready(attn3)
    ctx3_ref, attn3_ref = _reference(q3, k3, v3, scale3, None)
    assert jnp.allclose(ctx3, ctx3_ref, atol=2e-3, rtol=2e-3)
    assert jnp.allclose(attn3, attn3_ref, atol=2e-3, rtol=2e-3)

    print("KERNEL_OK")
</pallas_src>

<mosaic_0001>
module attributes {stable_mosaic.version = 11 : i64} {
  func.func @_attn_kernel_masked(%arg0: i32, %arg1: i32, %arg2: memref<2x8x32xf32, #tpu.memory_space<vmem>>, %arg3: memref<2x8x32xf32, #tpu.memory_space<vmem>>, %arg4: memref<2x8x32xf32, #tpu.memory_space<vmem>>, %arg5: memref<2x8x8xi8, #tpu.memory_space<vmem>>, %arg6: memref<2x8x32xf32, #tpu.memory_space<vmem>>, %arg7: memref<2x8x8xf32, #tpu.memory_space<vmem>>) attributes {dimension_semantics = [#tpu.dimension_semantics<parallel>, #tpu.dimension_semantics<parallel>], iteration_bounds = array<i64: 1, 1>, scalar_prefetch = 0 : i64, scratch_operands = 0 : i64, tpu.core_type = #tpu.core_type<tc>, window_params = [{transform_indices = @transform_0, window_bounds = array<i64: 2, 8, 32>}, {transform_indices = @transform_1, window_bounds = array<i64: 2, 8, 32>}, {transform_indices = @transform_2, window_bounds = array<i64: 2, 8, 32>}, {transform_indices = @transform_3, window_bounds = array<i64: 2, 8, 8>}, {transform_indices = @transform_4, window_bounds = array<i64: 2, 8, 32>}, {transform_indices = @transform_5, window_bounds = array<i64: 2, 8, 8>}]} {
    %c0 = arith.constant 0 : index
    %c0_0 = arith.constant 0 : index
    %c0_1 = arith.constant 0 : index
    %0 = vector.load %arg2[%c0, %c0_0, %c0_1] : memref<2x8x32xf32, #tpu.memory_space<vmem>>, vector<2x8x32xf32>
    %cst = arith.constant 0.176776692 : f32
    %1 = vector.broadcast %cst : f32 to vector<2x8x32xf32>
    %2 = arith.mulf %0, %1 : vector<2x8x32xf32>
    %c0_2 = arith.constant 0 : index
    %c0_3 = arith.constant 0 : index
    %c0_4 = arith.constant 0 : index
    %3 = vector.load %arg3[%c0_2, %c0_3, %c0_4] : memref<2x8x32xf32, #tpu.memory_space<vmem>>, vector<2x8x32xf32>
    %c0_5 = arith.constant 0 : index
    %c0_6 = arith.constant 0 : index
    %c0_7 = arith.constant 0 : index
    %4 = vector.load %arg4[%c0_5, %c0_6, %c0_7] : memref<2x8x32xf32, #tpu.memory_space<vmem>>, vector<2x8x32xf32>
    "tpu.trace_start"() <{level = 10 : i32, message = "bqd,bkd->bqk"}> : () -> ()
    %cst_8 = arith.constant dense<0.000000e+00> : vector<2x8x8xf32>
    %5 = tpu.matmul %2, %3, %cst_8 {dimension_numbers = #tpu.dot_dimension_numbers<[2], [2], [1], [1], [0, 0, 0, 1, 1, 1], [0], [0]>} : vector<2x8x32xf32>, vector<2x8x32xf32>, vector<2x8x8xf32> -> vector<2x8x8xf32>
    "tpu.trace_stop"() : () -> ()
    %c0_9 = arith.constant 0 : index
    %c0_10 = arith.constant 0 : index
    %c0_11 = arith.constant 0 : index
    %6 = vector.load %arg5[%c0_9, %c0_10, %c0_11] : memref<2x8x8xi8, #tpu.memory_space<vmem>>, vector<2x8x8xi8>
    %c0_i8 = arith.constant 0 : i8
    %7 = vector.broadcast %c0_i8 : i8 to vector<2x8x8xi8>
    %8 = arith.cmpi ne, %6, %7 : vector<2x8x8xi8>
    %cst_12 = arith.constant 9.99999971E-10 : f32
    %9 = vector.broadcast %cst_12 : f32 to vector<2x8x8xf32>
    %10 = arith.select %8, %9, %5 : vector<2x8x8xi1>, vector<2x8x8xf32>
    %cst_13 = arith.constant dense<0xFF800000> : vector<2x8xf32>
    %11 = vector.multi_reduction <maximumf>, %10, %cst_13 [2] : vector<2x8x8xf32> to vector<2x8xf32>
    %12 = vector.shape_cast %11 : vector<2x8xf32> to vector<2x8x1xf32>
    %13 = vector.broadcast %12 : vector<2x8x1xf32> to vector<2x8x8xf32>
    %14 = arith.subf %10, %13 : vector<2x8x8xf32>
    %15 = math.exp %14 : vector<2x8x8xf32>
    %cst_14 = arith.constant dense<0.000000e+00> : vector<2x8xf32>
    %16 = vector.multi_reduction <add>, %15, %cst_14 [2] : vector<2x8x8xf32> to vector<2x8xf32>
    %17 = vector.shape_cast %16 : vector<2x8xf32> to vector<2x8x1xf32>
    %18 = tpu.reciprocal %17 {approx = true} : vector<2x8x1xf32> -> vector<2x8x1xf32>
    %19 = vector.broadcast %18 : vector<2x8x1xf32> to vector<2x8x8xf32>
    %20 = arith.mulf %15, %19 : vector<2x8x8xf32>
    "tpu.trace_start"() <{level = 10 : i32, message = "bqk,bkd->bqd"}> : () -> ()
    %cst_15 = arith.constant dense<0.000000e+00> : vector<2x8x32xf32>
    %21 = tpu.matmul %20, %4, %cst_15 {dimension_numbers = #tpu.dot_dimension_numbers<[2], [1], [1], [2], [0, 0, 0, 1, 1, 2], [0], [0]>} : vector<2x8x8xf32>, vector<2x8x32xf32>, vector<2x8x32xf32> -> vector<2x8x32xf32>
    "tpu.trace_stop"() : () -> ()
    %c0_16 = arith.constant 0 : index
    %c0_17 = arith.constant 0 : index
    %c0_18 = arith.constant 0 : index
    %22 = vector.load %arg7[%c0_16, %c0_17, %c0_18] : memref<2x8x8xf32, #tpu.memory_space<vmem>>, vector<2x8x8xf32>
    tpu.vector_store %arg7[%c0_16, %c0_17, %c0_18], %20 {strides = array<i32>} : memref<2x8x8xf32, #tpu.memory_space<vmem>>, vector<2x8x8xf32>,
    %c0_19 = arith.constant 0 : index
    %c0_20 = arith.constant 0 : index
    %c0_21 = arith.constant 0 : index
    %23 = vector.load %arg6[%c0_19, %c0_20, %c0_21] : memref<2x8x32xf32, #tpu.memory_space<vmem>>, vector<2x8x32xf32>
    tpu.vector_store %arg6[%c0_19, %c0_20, %c0_21], %21 {strides = array<i32>} : memref<2x8x32xf32, #tpu.memory_space<vmem>>, vector<2x8x32xf32>,
    return
  }
  func.func @transform_0(%arg0: i32, %arg1: i32) -> (i32, i32, i32) {
    %c0_i32 = arith.constant 0 : i32
    %c0_i32_0 = arith.constant 0 : i32
    return %arg0, %arg1, %c0_i32 : i32, i32, i32
  }
  func.func @transform_1(%arg0: i32, %arg1: i32) -> (i32, i32, i32) {
    %c0_i32 = arith.constant 0 : i32
    %c0_i32_0 = arith.constant 0 : i32
    %c0_i32_1 = arith.constant 0 : i32
    return %arg0, %c0_i32, %c0_i32_0 : i32, i32, i32
  }
  func.func @transform_2(%arg0: i32, %arg1: i32) -> (i32, i32, i32) {
    %c0_i32 = arith.constant 0 : i32
    %c0_i32_0 = arith.constant 0 : i32
    %c0_i32_1 = arith.constant 0 : i32
    return %arg0, %c0_i32, %c0_i32_0 : i32, i32, i32
  }
  func.func @transform_3(%arg0: i32, %arg1: i32) -> (i32, i32, i32) {
    %c0_i32 = arith.constant 0 : i32
    %c0_i32_0 = arith.constant 0 : i32
    return %arg0, %arg1, %c0_i32 : i32, i32, i32
  }
  func.func @transform_4(%arg0: i32, %arg1: i32) -> (i32, i32, i32) {
    %c0_i32 = arith.constant 0 : i32
    %c0_i32_0 = arith.constant 0 : i32
    return %arg0, %arg1, %c0_i32 : i32, i32, i32
  }
  func.func @transform_5(%arg0: i32, %arg1: i32) -> (i32, i32, i32) {
    %c0_i32 = arith.constant 0 : i32
    %c0_i32_0 = arith.constant 0 : i32
    return %arg0, %arg1, %c0_i32 : i32, i32, i32
  }
}

</mosaic_0001>

<bundles_post_ra>
// kernel: tpu_custom_call.1
= control target key start
LH: loop header
LB: loop body
LE: loop exit
PB: predicated region body
PF: predicated region fallthrough
CT: control target
= control target key end

     0   :  { %11 = vsyncpa [#allocation3], 0  ;;  %s760_s0 = inlined_call_operand.hbm [shape: f32[2,8,32], index: 0, kind: input, shape index: {}]   ;;  %s761_s1 = inlined_call_operand.hbm [shape: f32[2,8,32], index: 1, kind: input, shape index: {}]   ;;  %s762_s2 = inlined_call_operand.hbm [shape: f32[2,8,32], index: 2, kind: input, shape index: {}]   ;;  %s763_s3 = inlined_call_operand.vmem [shape: s8[2,8,8], index: 3, kind: input, shape index: {}]   ;;  %s764_s4 = inlined_call_operand.hbm [shape: f32[2,8,32], index: 4, kind: output, shape index: {0}]   ;;  %s765_s5 = inlined_call_operand.hbm [shape: f32[2,8,8], index: 5, kind: output, shape index: {1}]  }
   0x1   :  { %12 = vsyncpa [#allocation6], 0 }
   0x2   :  { %13 = vsyncpa [#allocation4], 0 }
   0x3   :  { %14 = vsyncpa [#allocation10], 0  ;;  %s614_s18 = smov [#allocation5]   ;;  %s615_s20 = smov [#allocation2]  }
   0x4   :  { %s32_s19 = sshll.u32 %s614_s18, 4  ;;  %s20_s21 = sshll.u32 %s615_s20, 4  ;;  %s33_s19 = int_to_ptr.vmem [resolvable:$true] %s32_s19  ;;  %s654_s21 = int_to_ptr.vmem [resolvable:$true] %s20_s21 }
   0x5   :  { %s496_s24 = scalar_lea.hbm %s761_s1, 256 }
   0x6   :  { %p497_p0 = scmp.ne.s32.totalorder %s761_s1, %s496_s24  ;;  %p500_p1 = scmp.lt.u32.totalorder %s496_s24, %s761_s1 }
   0x8   :  { %p502_p2 = pnand %p500_p1, %p497_p0 }
   0xa   :  { %505 = shalt.err (!%p502_p2)
}
   0xb   :  { %s506_s29 = scalar_lea.vmem %s33_s19, 256  ;;  %p511_p4 = scmp.lt.s32.totalorder %s33_s19, %s33_s19 }
   0xc   :  { %p507_p3 = scmp.ne.s32.totalorder %s33_s19, %s506_s29  ;;  %p512_p5 = scmp.lt.s32.totalorder %s506_s29, %s506_s29 }
   0xe   :  { %p513_p6 = por %p512_p5, %p511_p4 }
  0x10   :  { %p514_p7 = pnand %p513_p6, %p507_p3 }
  0x12   :  { %517 = shalt.err (!%p514_p7)
}
  0x13   :  { %s616_s30 = smov 128   ;;  %s617_s6 = smov 8  }
  0x14   :  { %38 = dma.hbm_to_vmem [thread:$0]  %s761_s1, 256, %s33_s19, [#allocation6], %s616_s30, %s616_s30, %s617_s6  }
  0x15   :  { %s518_s11 = scalar_lea.hbm %s760_s0, 256 }
  0x16   :  { %p519_p8 = scmp.ne.s32.totalorder %s760_s0, %s518_s11  ;;  %p522_p9 = scmp.lt.u32.totalorder %s518_s11, %s760_s0 }
  0x18   :  { %p524_p10 = pnand %p522_p9, %p519_p8 }
  0x1a   :  { %527 = shalt.err (!%p524_p10)
}
  0x1b   :  { %s528_s16 = scalar_lea.vmem %s654_s21, 256  ;;  %p533_p12 = scmp.lt.s32.totalorder %s654_s21, %s654_s21 }
  0x1c   :  { %p529_p11 = scmp.ne.s32.totalorder %s654_s21, %s528_s16  ;;  %p534_p13 = scmp.lt.s32.totalorder %s528_s16, %s528_s16 }
  0x1e   :  { %p535_p0 = por %p534_p13, %p533_p12 }
  0x20   :  { %p536_p1 = pnand %p535_p0, %p529_p11 }
  0x22   :  { %539 = shalt.err (!%p536_p1)
}
  0x23   :  { %26 = dma.hbm_to_vmem [thread:$0]  %s760_s0, 256, %s654_s21, [#allocation3], %s616_s30, %s616_s30, %s617_s6  }
  0x24   :  { %s618_s18 = smov [#allocation7]   ;;  %s540_s23 = scalar_lea.hbm %s762_s2, 256 }
  0x25   :  { %s44_s19 = sshll.u32 %s618_s18, 4  ;;  %p541_p2 = scmp.ne.s32.totalorder %s762_s2, %s540_s23  ;;  %s45_s19 = int_to_ptr.vmem [resolvable:$true] %s44_s19 }
  0x26   :  { %p544_p3 = scmp.lt.u32.totalorder %s540_s23, %s762_s2 }
  0x28   :  { %p546_p4 = pnand %p544_p3, %p541_p2 }
  0x2a   :  { %549 = shalt.err (!%p546_p4)
}
  0x2b   :  { %s550_s28 = scalar_lea.vmem %s45_s19, 256  ;;  %p555_p6 = scmp.lt.s32.totalorder %s45_s19, %s45_s19 }
  0x2c   :  { %p551_p5 = scmp.ne.s32.totalorder %s45_s19, %s550_s28  ;;  %p556_p7 = scmp.lt.s32.totalorder %s550_s28, %s550_s28 }
  0x2e   :  { %p557_p8 = por %p556_p7, %p555_p6 }
  0x30   :  { %p558_p9 = pnand %p557_p8, %p551_p5 }
  0x32   :  { %561 = shalt.err (!%p558_p9)
}
  0x33   :  { %50 = dma.hbm_to_vmem [thread:$0]  %s762_s2, 256, %s45_s19, [#allocation6], %s616_s30, %s616_s30, %s617_s6  }
  0x34   :  { %606 = dma.done.wait [#allocation3], 256  }
  0x35   :  { %607 = vsyncadd [#allocation3], 4294967040 }
  0x36   :  { %608 = dma.done.wait [#allocation6], 512  }
  0x37   :  { %609 = vsyncadd [#allocation6], 4294966784  ;;  %v619_v0 = vmov 0.0   ;;  %vm620_vm0 = vmmov 0   ;;  %vm72_vm1 = vcmask 261120   ;;  %v68_v1 = vld [vmem:[#allocation5] sm:$0xff] }
  0x38   :  { %458 = vmatprep.subr.mxu0 %v619_v0  ;;  %460 = vmatprep.mubr.msk.f32.mxu0 %vm620_vm0, %v619_v0  ;;  %v64_v2 = vld [vmem:[#allocation2] sm:$0xff]  ;;  %v69_v3 = vld [vmem:[#allocation5 + $0x8] sm:$0xff]  ;;  %v65_v5 = vld [vmem:[#allocation2 + $0x8] sm:$0xff]  ;;  %v621_v9 = vmov 0   ;;  %vm237_vm6 = vcmask 64512  }
  0x39   :  { %463 = vmatprep.subr.mxu1 %v619_v0  ;;  %465 = vmatprep.mubr.msk.f32.mxu1 %vm620_vm0, %v619_v0  ;;  %v66_v4 = vmul.f32 0.17677669, %v64_v2  ;;  %v67_v6 = vmul.f32 0.17677669, %v65_v5  ;;  %v225_v7 = vld [vmem:[%s763_s3] sm:$0x3] }
  0x3a   :  { %459 = vmatpush3.xpose.msk.msra.mxu0 %vm72_vm1, %v68_v1  ;;  %464 = vmatpush3.xpose.msk.msra.mxu1 %vm72_vm1, %v69_v3  ;;  %v226_v8 = vld [vmem:[%s763_s3 + $0x2] sm:$0x3]  ;;  %vm227_vm2 = vnez %v225_v7  ;;  %v71_v33 = vld [vmem:[#allocation7 + $0x8] sm:$0xff]  ;;  %s622_s3 = smov [#allocation9]  }
  0x3b   :  { %468 = vmatprep.subr.mxu0 %v619_v0  ;;  %473 = vmatprep.subr.mxu1 %v619_v0  ;;  %vm228_vm3 = vnez %v226_v8  ;;  %v229_v10 = vsel %vm227_vm2, 16843009, %v621_v9  ;;  %v70_v32 = vld [vmem:[#allocation7] sm:$0xff]  ;;  %s427_s9 = sshll.u32 %s622_s3, 4  ;;  %s428_s9 = int_to_ptr.vmem [resolvable:$true] %s427_s9 }
  0x3c   :  { %v230_v11 = vsel %vm228_vm3, 16843009, %v621_v9  ;;  %v231_v12 = vunpack.c.0.s8 %v229_v10  ;;  %s562_s10 = scalar_lea.vmem %s428_s9, 256  ;;  %p567_p11 = scmp.lt.s32.totalorder %s428_s9, %s428_s9 }
  0x3d   :  { %461 = vmatmul.mubr.msk.f32.vlgmr.msra.gmra.mrb[0].mxu0 %vm72_vm1, %v66_v4  ;;  %466 = vmatmul.mubr.msk.f32.vlgmr.msra.gmra.mrb[0].mxu1 %vm72_vm1, %v67_v6  ;;  %v232_v13 = vunpack.c.0.s8 %v230_v11  ;;  %p563_p10 = scmp.ne.s32.totalorder %s428_s9, %s562_s10  ;;  %p568_p12 = scmp.lt.s32.totalorder %s562_s10, %s562_s10 }
  0x3e   :  { %470 = vmatprep.mubr.msk.f32.mxu0 %vm620_vm0, %v619_v0  ;;  %475 = vmatprep.mubr.msk.f32.mxu1 %vm620_vm0, %v619_v0  ;;  %vm233_vm4 = vcmp.ne.s32.totalorder %v231_v12, 0 }
  0x3f   :  { %vm234_vm5 = vcmp.ne.s32.totalorder %v232_v13, 0  ;;  %469 = vmatpush3.msra.mxu0 %v70_v32  ;;  %474 = vmatpush3.msra.mxu1 %v71_v33  ;;  %p569_p13 = por %p568_p12, %p567_p11 }
  0x41   :  { %p570_p0 = pnand %p569_p13, %p563_p10 }
 0x110   :  { %v145_v14 = vpop.f32.mrb[0].mxu0  ;;  %v221_v15 = vpop.f32.mrb[0].mxu1 }
 0x111   :  { %v235_v16 = vsel %vm233_vm4, 1e-09, %v145_v14  ;;  %v462_v17 = vpop.f32.mrb[1].mxu0  ;;  %v236_v18 = vsel %vm234_vm5, 1e-09, %v221_v15  ;;  %v467_v19 = vpop.f32.mrb[1].mxu1 }
 0x112   :  { %v238_v20 = vsel %vm237_vm6, %v235_v16, -inf  ;;  %v241_v21 = vsel %vm237_vm6, %v236_v18, -inf }
 0x113   :  { %239 = vmax.xlane.f32.xlu0 %v238_v20 }
 0x117   :  { %242 = vmax.xlane.f32.xlu0 %v241_v21 }
 0x1a0   :  { %v240_v22 = vpop.xlane.xlu0 %239 }
 0x1a1   :  { %v244_v23 = vsub.f32 %v235_v16, %v240_v22 }
 0x1a3   :  { %v246_v24 = vmul.f32 1.442695, %v244_v23 }
 0x1a4   :  { %v243_v25 = vpop.xlane.xlu0 %242 }
 0x1a5   :  { %488 = vpow2.f32 %v246_v24  ;;  %v245_v26 = vsub.f32 %v236_v18, %v243_v25 }
 0x1a7   :  { %v248_v27 = vmul.f32 1.442695, %v245_v26 }
 0x1a9   :  { %490 = vpow2.f32 %v248_v27 }
 0x1af   :  { %v489_v28 = vpop.eup %488 }
 0x1b0   :  { %v250_v29 = vsel %vm237_vm6, %v489_v28, 0.0 }
 0x1b1   :  { %251 = vadd.xlane.f32.xlu1 %v250_v29 }
 0x1b3   :  { %v491_v30 = vpop.eup %490 }
 0x1b4   :  { %v253_v31 = vsel %vm237_vm6, %v491_v30, 0.0 }
 0x1b5   :  { %254 = vadd.xlane.f32.xlu1 %v253_v31 }
 0x23e   :  { %v252_v34 = vpop.xlane.xlu1 %251 }
 0x23f   :  { %492 = vrcp.f32 %v252_v34 }
 0x242   :  { %v255_v35 = vpop.xlane.xlu1 %254 }
 0x243   :  { %494 = vrcp.f32 %v255_v35 }
 0x249   :  { %v493_v36 = vpop.eup %492 }
 0x24a   :  { %v258_v37 = vmul.f32 %v493_v36, %v489_v28 }
 0x24c   :  { %406 = vst.msk [vmem:[#allocation9] sm:$0xff] %vm237_vm6, %v258_v37  ;;  %471 = vmatmul.mubr.msk.f32.vlgmr.msra.gmra.mrb[2].mxu0 %vm237_vm6, %v258_v37 }
 0x24d   :  { %v495_v38 = vpop.eup %494 }
 0x24e   :  { %v259_v39 = vmul.f32 %v495_v38, %v491_v30 }
 0x250   :  { %407 = vst.msk [vmem:[#allocation9 + $0x8] sm:$0xff] %vm237_vm6, %v259_v39  ;;  %476 = vmatmul.mubr.msk.f32.vlgmr.msra.gmra.mrb[2].mxu1 %vm237_vm6, %v259_v39 }
 0x251   :  { %573 = shalt.err (!%p570_p0)
}
 0x252   :  { %s574_s13 = scalar_lea.hbm %s765_s5, 256 }
 0x253   :  { %p575_p1 = scmp.ne.s32.totalorder %s765_s5, %s574_s13  ;;  %p578_p2 = scmp.lt.u32.totalorder %s574_s13, %s765_s5 }
 0x255   :  { %p580_p3 = pnand %p578_p2, %p575_p1 }
 0x257   :  { %583 = shalt.err (!%p580_p3)
}
 0x258   :  { %433 = dma.vmem_to_hbm [thread:$0]  %s428_s9, 256, %s765_s5, [#allocation10], %s616_s30, %s616_s30, %s617_s6  }
 0x259   :  { %s623_s19 = smov [#allocation8]  }
 0x25a   :  { %s415_s20 = sshll.u32 %s623_s19, 4  ;;  %s416_s20 = int_to_ptr.vmem [resolvable:$true] %s415_s20 }
 0x25b   :  { %s584_s22 = scalar_lea.vmem %s416_s20, 256  ;;  %p589_p5 = scmp.lt.s32.totalorder %s416_s20, %s416_s20 }
 0x25c   :  { %p585_p4 = scmp.ne.s32.totalorder %s416_s20, %s584_s22  ;;  %p590_p6 = scmp.lt.s32.totalorder %s584_s22, %s584_s22 }
 0x25e   :  { %p591_p7 = por %p590_p6, %p589_p5 }
 0x260   :  { %p592_p8 = pnand %p591_p7, %p585_p4 }
 0x31f   :  { %v329_v40 = vpop.f32.mrb[2].mxu0 }
 0x320   :  { %408 = vst.msk [vmem:[#allocation8] sm:$0xff] %vm72_vm1, %v329_v40  ;;  %v472_v41 = vpop.f32.mrb[3].mxu0 }
 0x323   :  { %v402_v42 = vpop.f32.mrb[2].mxu1 }
 0x324   :  { %409 = vst.msk [vmem:[#allocation8 + $0x8] sm:$0xff] %vm72_vm1, %v402_v42  ;;  %v477_v43 = vpop.f32.mrb[3].mxu1 }
 0x325   :  { %595 = shalt.err (!%p592_p8)
}
 0x326   :  { %s596_s24 = scalar_lea.hbm %s764_s4, 256 }
 0x327   :  { %p597_p9 = scmp.ne.s32.totalorder %s764_s4, %s596_s24  ;;  %p600_p10 = scmp.lt.u32.totalorder %s596_s24, %s764_s4 }
 0x329   :  { %p602_p11 = pnand %p600_p10, %p597_p9 }
 0x32b   :  { %605 = shalt.err (!%p602_p11)
}
 0x32c   :  { %421 = dma.vmem_to_hbm [thread:$0]  %s416_s20, 256, %s764_s4, [#allocation4], %s616_s30, %s616_s30, %s617_s6  }
 0x32d   :  { %610 = dma.done.wait [#allocation4], 256  }
 0x32e   :  { %611 = vsyncadd [#allocation4], 4294967040 }
 0x32f   :  { %612 = dma.done.wait [#allocation10], 256  }
 0x330   :  { %613 = vsyncadd [#allocation10], 4294967040 }
 0x331   :  { %440 = vsyncpa [#allocation3], 1 }
 0x332   :  { %441 = vsyncpa [#allocation6], 1 }
 0x333   :  { %442 = vsyncpa [#allocation4], 1 }
 0x334   :  { %443 = vsyncpa [#allocation10], 1 }

</bundles_post_ra>
